<compile_context>
chip_gen: v7x
topology: tpu7x:2x2x1
jax: 0.10.0
libtpu: 0.0.40
codegen_flags: <defaults>
</compile_context>

<pallas_src>
import functools

import jax
import jax.numpy as jnp
import numpy as np
from jax.experimental import pallas as pl
from jax.experimental.pallas import tpu as pltpu


def _round_up(x, m):
    return ((x + m - 1) // m) * m


def _ncm_kernel(scal_ref, x_ref, mt_ref, m2_ref, probs_ref, exp_ref, dist_ref):
    inv_std_sq = scal_ref[0]      # (1/std)^2
    two_inv_std = scal_ref[1]     # 2/std

    x = x_ref[...]                                              # (TB, F) f32

    # cross term on the MXU; means already transposed to (F, Cp) in the wrapper
    xm = jnp.dot(x, mt_ref[...],
                 preferred_element_type=jnp.float32,
                 precision=jax.lax.Precision.HIGHEST)           # (TB, Cp)
    x2 = jnp.sum(x * x, axis=-1, keepdims=True)                 # (TB, 1)

    # ||x/std - m||^2 = (1/std^2)||x||^2 - (2/std) x.m + ||m||^2
    sq = inv_std_sq * x2 - two_inv_std * xm + m2_ref[...]       # (1, Cp) broadcast
    sq = jnp.maximum(sq, 0.0)        # clamp tiny negatives from cancellation
    dist = jnp.sqrt(sq)              # torch.norm(..., p=2, dim=2)
    exponent = -dist                 # padded class lanes -> -inf

    # numerically stable softmax over the class axis (padded lanes contribute 0)
    row_max = jnp.max(exponent, axis=1, keepdims=True)
    e = jnp.exp(exponent - row_max)
    denom = jnp.sum(e, axis=1, keepdims=True)
    probs = e / denom                # exact divide (approx reciprocal broke 1e-4)

    probs_ref[...] = probs
    exp_ref[...] = exponent
    dist_ref[...] = dist


def _pick_batch_tile(B, batch_tile):
    if B <= 8:
        return B                     # single full-dim block (always a legal shape)
    # Aim for >= 2 grid steps so v7x's second TensorCore gets work; keep TB a
    # multiple of 8 (sublane granularity) and capped by batch_tile.
    tb = _round_up(-(-B // 2), 8)
    return int(max(8, min(batch_tile, tb)))


@functools.partial(jax.jit, static_argnames=("batch_tile",))
def ncm_forward(x, means, variance, *, batch_tile=256):
    """x: (B, F) f32, means: (C, F) f32, variance: (1,) f32 -> (probs, exponent, dist)."""
    B, F = x.shape
    C, _ = means.shape

    TB = _pick_batch_tile(B, batch_tile)
    # Lane-dense stores only pay off when the class axis is already wide; for the
    # module's tiny C (~8-10) keep the full-dim block (masked vst is far cheaper
    # than 13-16x extra output bytes / exp / sqrt work).
    C_pad = C if C <= 128 else _round_up(C, 128)

    x = x.astype(jnp.float32)
    means_f = means.astype(jnp.float32)

    # One-time wrapper-side transpose: kernel consumes means as (F, C_pad).
    means_t = means_f.T                                          # (F, C)
    # ||means||^2 hoisted out of the kernel (constant across batch tiles).
    m2 = jnp.sum(means_f * means_f, axis=-1)[None, :]            # (1, C)
    if C_pad != C:
        means_t = jnp.pad(means_t, ((0, 0), (0, C_pad - C)))     # zero rows -> x.m finite
        m2 = jnp.pad(m2, ((0, 0), (0, C_pad - C)),
                     constant_values=jnp.float32(jnp.inf))       # dist=inf -> softmax 0

    # PyTorch uses self.variance directly as "std" (including its -1 init).
    inv_std = 1.0 / variance.astype(jnp.float32).reshape(-1)[0]
    scalars = jnp.stack([inv_std * inv_std, 2.0 * inv_std]).astype(jnp.float32)

    grid = (pl.cdiv(B, TB),)

    grid_spec = pltpu.PrefetchScalarGridSpec(
        num_scalar_prefetch=0,
        grid=grid,
        in_specs=[
            pl.BlockSpec(memory_space=pltpu.MemorySpace.SMEM),   # [inv_std^2, 2*inv_std]
            pl.BlockSpec((TB, F), lambda i: (i, 0)),             # x batch tile
            pl.BlockSpec((F, C_pad), lambda i: (0, 0)),          # means^T (resident)
            pl.BlockSpec((1, C_pad), lambda i: (0, 0)),          # ||means||^2 row
        ],
        out_specs=[
            pl.BlockSpec((TB, C_pad), lambda i: (i, 0)),         # probs
            pl.BlockSpec((TB, C_pad), lambda i: (i, 0)),         # exponent
            pl.BlockSpec((TB, C_pad), lambda i: (i, 0)),         # dist
        ],
    )

    probs, exponent, dist = pl.pallas_call(
        _ncm_kernel,
        grid_spec=grid_spec,
        out_shape=(
            jax.ShapeDtypeStruct((B, C_pad), jnp.float32),
            jax.ShapeDtypeStruct((B, C_pad), jnp.float32),
            jax.ShapeDtypeStruct((B, C_pad), jnp.float32),
        ),
        compiler_params=pltpu.CompilerParams(
            dimension_semantics=("parallel",),       # batch tiles across TCs (v7x)
            vmem_limit_bytes=32 * 1024 * 1024,       # safe on v5e/v6e/v7x scoped budgets
        ),
    )(scalars, x, means_t, m2)

    if C_pad != C:
        probs = probs[:, :C]
        exponent = exponent[:, :C]
        dist = dist[:, :C]
    return probs, exponent, dist


def ncm_reference(x, means, variance):
    xs = x / variance.reshape(-1)[0]
    diff = xs[:, None, :] - means[None, :, :]
    dist = jnp.sqrt(jnp.sum(diff * diff, axis=-1))
    exponent = -dist
    probs = jax.nn.softmax(exponent, axis=1)
    return probs, exponent, dist


def _check(actual, reference):
    for a, r in zip(actual, reference):
        np.testing.assert_allclose(np.asarray(a), np.asarray(r), rtol=2e-4, atol=1e-4)


if __name__ == "__main__":
    # Small shapes consistent with the module: features=32, num_classes=8, batch=8.
    B, F, C = 8, 32, 8
    key = jax.random.PRNGKey(0)
    kx, km = jax.random.split(key)
    x = jax.random.normal(kx, (B, F), dtype=jnp.float32)
    # means would normally be filled by update_means; random values keep the
    # forward non-degenerate. variance keeps its __init__ value of -1 (used
    # directly as "std", exactly as in PyTorch).
    means = jax.random.normal(km, (C, F), dtype=jnp.float32)
    variance = jnp.full((1,), -1.0, dtype=jnp.float32)
    # TODO(synk): update_means / reject / add_classes / reset / forward_nno are
    # stateful training-time utilities with data-dependent control flow; only
    # forward() (deep_nno=False, use_variance=False) is implemented.

    out = jax.block_until_ready(ncm_forward(x, means, variance))
    _check(out, ncm_reference(x, means, variance))

    # Multi-tile batch with a partial last block (grid=2, no batch padding).
    B2, F2, C2 = 300, 64, 10
    k1, k2 = jax.random.split(jax.random.PRNGKey(1))
    x2 = jax.random.normal(k1, (B2, F2), dtype=jnp.float32)
    means2 = jax.random.normal(k2, (C2, F2), dtype=jnp.float32)
    var2 = jnp.full((1,), 1.7, dtype=jnp.float32)
    out2 = jax.block_until_ready(ncm_forward(x2, means2, var2))
    _check(out2, ncm_reference(x2, means2, var2))

    # Wide class count -> exercises the 128-padded (lane-dense) class path.
    B3, F3, C3 = 64, 32, 160
    k3, k4 = jax.random.split(jax.random.PRNGKey(2))
    x3 = jax.random.normal(k3, (B3, F3), dtype=jnp.float32)
    means3 = jax.random.normal(k4, (C3, F3), dtype=jnp.float32)
    var3 = jnp.full((1,), 0.9, dtype=jnp.float32)
    out3 = jax.block_until_ready(ncm_forward(x3, means3, var3))
    _check(out3, ncm_reference(x3, means3, var3))

    print("KERNEL_OK")
</pallas_src>

<mosaic_0001>
module attributes {stable_mosaic.version = 11 : i64} {
  func.func @_ncm_kernel(%arg0: i32, %arg1: memref<2xf32, #tpu.memory_space<smem>>, %arg2: memref<8x32xf32, #tpu.memory_space<vmem>>, %arg3: memref<32x8xf32, #tpu.memory_space<vmem>>, %arg4: memref<1x8xf32, #tpu.memory_space<vmem>>, %arg5: memref<8x8xf32, #tpu.memory_space<vmem>>, %arg6: memref<8x8xf32, #tpu.memory_space<vmem>>, %arg7: memref<8x8xf32, #tpu.memory_space<vmem>>) attributes {dimension_semantics = [#tpu.dimension_semantics<parallel>], iteration_bounds = array<i64: 1>, scalar_prefetch = 0 : i64, scratch_operands = 0 : i64, tpu.core_type = #tpu.core_type<tc>, window_params = [{transform_indices = @transform_0, window_bounds = array<i64: 2>}, {transform_indices = @transform_1, window_bounds = array<i64: 8, 32>}, {pipeline_mode = #tpu.pipeline_mode<synchronous>, transform_indices = @transform_2, window_bounds = array<i64: 32, 8>}, {pipeline_mode = #tpu.pipeline_mode<synchronous>, transform_indices = @transform_3, window_bounds = array<i64: 1, 8>}, {transform_indices = @transform_4, window_bounds = array<i64: 8, 8>}, {transform_indices = @transform_5, window_bounds = array<i64: 8, 8>}, {transform_indices = @transform_6, window_bounds = array<i64: 8, 8>}]} {
    %c0 = arith.constant 0 : index
    %0 = memref.load %arg1[%c0] : memref<2xf32, #tpu.memory_space<smem>>
    %c1 = arith.constant 1 : index
    %1 = memref.load %arg1[%c1] : memref<2xf32, #tpu.memory_space<smem>>
    %c0_0 = arith.constant 0 : index
    %c0_1 = arith.constant 0 : index
    %2 = vector.load %arg2[%c0_0, %c0_1] : memref<8x32xf32, #tpu.memory_space<vmem>>, vector<8x32xf32>
    %c0_2 = arith.constant 0 : index
    %c0_3 = arith.constant 0 : index
    %3 = vector.load %arg3[%c0_2, %c0_3] : memref<32x8xf32, #tpu.memory_space<vmem>>, vector<32x8xf32>
    %cst = arith.constant dense<0.000000e+00> : vector<8x8xf32>
    %4 = tpu.matmul %2, %3, %cst {dimension_numbers = #tpu.dot_dimension_numbers<[1], [0], [0], [1], [0, 0, 1, 1], [], []>, precision = #tpu.contract_precision<fp32>} : vector<8x32xf32>, vector<32x8xf32>, vector<8x8xf32> -> vector<8x8xf32>
    %5 = arith.mulf %2, %2 : vector<8x32xf32>
    %cst_4 = arith.constant dense<0.000000e+00> : vector<8xf32>
    %6 = vector.multi_reduction <add>, %5, %cst_4 [1] : vector<8x32xf32> to vector<8xf32>
    %7 = vector.shape_cast %6 : vector<8xf32> to vector<8x1xf32>
    %8 = vector.broadcast %0 : f32 to vector<8x1xf32>
    %9 = arith.mulf %8, %7 : vector<8x1xf32>
    %10 = vector.broadcast %1 : f32 to vector<8x8xf32>
    %11 = arith.mulf %10, %4 : vector<8x8xf32>
    %12 = vector.broadcast %9 : vector<8x1xf32> to vector<8x8xf32>
    %13 = arith.subf %12, %11 : vector<8x8xf32>
    %c0_5 = arith.constant 0 : index
    %c0_6 = arith.constant 0 : index
    %14 = vector.load %arg4[%c0_5, %c0_6] : memref<1x8xf32, #tpu.memory_space<vmem>>, vector<1x8xf32>
    %15 = vector.broadcast %14 : vector<1x8xf32> to vector<8x8xf32>
    %16 = arith.addf %13, %15 : vector<8x8xf32>
    %cst_7 = arith.constant 0.000000e+00 : f32
    %17 = vector.broadcast %cst_7 : f32 to vector<8x8xf32>
    %18 = arith.maximumf %16, %17 : vector<8x8xf32>
    %19 = math.sqrt %18 : vector<8x8xf32>
    %cst_8 = arith.constant 0.000000e+00 : f32
    %20 = vector.broadcast %cst_8 : f32 to vector<8x8xf32>
    %21 = arith.subf %20, %19 : vector<8x8xf32>
    %cst_9 = arith.constant dense<0xFF800000> : vector<8xf32>
    %22 = vector.multi_reduction <maximumf>, %21, %cst_9 [1] : vector<8x8xf32> to vector<8xf32>
    %23 = vector.shape_cast %22 : vector<8xf32> to vector<8x1xf32>
    %24 = vector.broadcast %23 : vector<8x1xf32> to vector<8x8xf32>
    %25 = arith.subf %21, %24 : vector<8x8xf32>
    %26 = math.exp %25 : vector<8x8xf32>
    %cst_10 = arith.constant dense<0.000000e+00> : vector<8xf32>
    %27 = vector.multi_reduction <add>, %26, %cst_10 [1] : vector<8x8xf32> to vector<8xf32>
    %28 = vector.shape_cast %27 : vector<8xf32> to vector<8x1xf32>
    %29 = vector.broadcast %28 : vector<8x1xf32> to vector<8x8xf32>
    %30 = arith.divf %26, %29 : vector<8x8xf32>
    %c0_11 = arith.constant 0 : index
    %c0_12 = arith.constant 0 : index
    %31 = vector.load %arg5[%c0_11, %c0_12] : memref<8x8xf32, #tpu.memory_space<vmem>>, vector<8x8xf32>
    tpu.vector_store %arg5[%c0_11, %c0_12], %30 {strides = array<i32>} : memref<8x8xf32, #tpu.memory_space<vmem>>, vector<8x8xf32>,
    %c0_13 = arith.constant 0 : index
    %c0_14 = arith.constant 0 : index
    %32 = vector.load %arg6[%c0_13, %c0_14] : memref<8x8xf32, #tpu.memory_space<vmem>>, vector<8x8xf32>
    tpu.vector_store %arg6[%c0_13, %c0_14], %21 {strides = array<i32>} : memref<8x8xf32, #tpu.memory_space<vmem>>, vector<8x8xf32>,
    %c0_15 = arith.constant 0 : index
    %c0_16 = arith.constant 0 : index
    %33 = vector.load %arg7[%c0_15, %c0_16] : memref<8x8xf32, #tpu.memory_space<vmem>>, vector<8x8xf32>
    tpu.vector_store %arg7[%c0_15, %c0_16], %19 {strides = array<i32>} : memref<8x8xf32, #tpu.memory_space<vmem>>, vector<8x8xf32>,
    return
  }
  func.func @transform_0(%arg0: i32) -> i32 {
    %c0_i32 = arith.constant 0 : i32
    %c0_i32_0 = arith.constant 0 : i32
    return %c0_i32 : i32
  }
  func.func @transform_1(%arg0: i32) -> (i32, i32) {
    %c0_i32 = arith.constant 0 : i32
    %c0_i32_0 = arith.constant 0 : i32
    return %arg0, %c0_i32 : i32, i32
  }
  func.func @transform_2(%arg0: i32) -> (i32, i32) {
    %c0_i32 = arith.constant 0 : i32
    %c0_i32_0 = arith.constant 0 : i32
    %c0_i32_1 = arith.constant 0 : i32
    return %c0_i32, %c0_i32_0 : i32, i32
  }
  func.func @transform_3(%arg0: i32) -> (i32, i32) {
    %c0_i32 = arith.constant 0 : i32
    %c0_i32_0 = arith.constant 0 : i32
    %c0_i32_1 = arith.constant 0 : i32
    return %c0_i32, %c0_i32_0 : i32, i32
  }
  func.func @transform_4(%arg0: i32) -> (i32, i32) {
    %c0_i32 = arith.constant 0 : i32
    %c0_i32_0 = arith.constant 0 : i32
    return %arg0, %c0_i32 : i32, i32
  }
  func.func @transform_5(%arg0: i32) -> (i32, i32) {
    %c0_i32 = arith.constant 0 : i32
    %c0_i32_0 = arith.constant 0 : i32
    return %arg0, %c0_i32 : i32, i32
  }
  func.func @transform_6(%arg0: i32) -> (i32, i32) {
    %c0_i32 = arith.constant 0 : i32
    %c0_i32_0 = arith.constant 0 : i32
    return %arg0, %c0_i32 : i32, i32
  }
}

</mosaic_0001>

<bundles_post_ra>
// kernel: ncm_forward.1
= control target key start
LH: loop header
LB: loop body
LE: loop exit
PB: predicated region body
PF: predicated region fallthrough
CT: control target
= control target key end

     0   :  { %12 = vsyncpa [#allocation4], 0  ;;  %s976_s0 = inlined_call_operand.vmem [shape: f32[2], index: 0, kind: input, shape index: {}]   ;;  %s977_s1 = inlined_call_operand.vmem [shape: f32[8,32], index: 1, kind: input, shape index: {}]   ;;  %s978_s2 = inlined_call_operand.vmem [shape: f32[32,8], index: 2, kind: input, shape index: {}]   ;;  %s979_s3 = inlined_call_operand.vmem [shape: f32[1,8], index: 3, kind: input, shape index: {}]   ;;  %s980_s4 = inlined_call_operand.hbm [shape: f32[8,8], index: 4, kind: output, shape index: {0}]   ;;  %s981_s5 = inlined_call_operand.hbm [shape: f32[8,8], index: 5, kind: output, shape index: {1}]   ;;  %s982_s6 = inlined_call_operand.hbm [shape: f32[8,8], index: 6, kind: output, shape index: {2}]  }
   0x1   :  { %13 = vsyncpa [#allocation3], 0 }
   0x2   :  { %14 = vsyncpa [#allocation7], 0  ;;  %s21_s23 = sshll.u32 %s976_s0, 4  ;;  %s22_s23 = int_to_ptr.vmem [resolvable:$true] %s21_s23 }
   0x3   :  { %s770_s24 = scalar_lea.vmem %s22_s23, 16  ;;  %p775_p1 = scmp.lt.s32.totalorder %s22_s23, %s22_s23 }
   0x4   :  { %p771_p0 = scmp.ne.s32.totalorder %s22_s23, %s770_s24  ;;  %p776_p2 = scmp.lt.s32.totalorder %s770_s24, %s770_s24 }
   0x6   :  { %p777_p3 = por %p776_p2, %p775_p1 }
   0x8   :  { %p778_p4 = pnand %p777_p3, %p771_p0 }
   0xa   :  { %781 = shalt.err (!%p778_p4)
}
   0xb   :  { %s854_s25 = smov [#allocation2]  }
   0xc   :  { %24 = dma.vmem_to_smem %s22_s23, 16, %s854_s25, [#allocation4]  }
   0xd   :  { %848 = dma.done.wait [#allocation4], 16  }
   0xe   :  { %849 = vsyncadd [#allocation4], 4294967280 }
   0xf   :  { %34 = sfence }
  0x10   :  { %v38_v0 = vld [vmem:[%s978_s2] sm:$0xff]  ;;  %v39_v1 = vld [vmem:[%s978_s2 + $0x8] sm:$0xff]  ;;  %v40_v2 = vld [vmem:[%s978_s2 + $0x10] sm:$0xff]  ;;  %v855_v3 = vmov 0.0|0.0   ;;  %vm42_vm0 = vcmask 261120   ;;  %vm856_vm1 = vmmov 0  }
  0x11   :  { %712 = vmatprep.subr.bf16.mxu1 %v855_v3  ;;  %730 = vmatprep.subr.bf16.mxu0 %v855_v3  ;;  %v47_v4 = vand.u32 4294901760, %v38_v0  ;;  %v50_v5 = vand.u32 4294901760, %v39_v1  ;;  %v41_v6 = vld [vmem:[%s978_s2 + $0x18] sm:$0xff]  ;;  %v53_v7 = vand.u32 4294901760, %v40_v2  ;;  %v37_v8 = vld [vmem:[%s977_s1] sm:$0xff]  ;;  %v857_v10 = vmov 0.0  }
  0x12   :  { %v56_v9 = vand.u32 4294901760, %v41_v6  ;;  %654 = vmatprep.mubr.msk.f32.mxu1 %vm856_vm1, %v857_v10  ;;  %687 = vmatprep.mubr.msk.f32.mxu0 %vm856_vm1, %v857_v10  ;;  %v44_v11 = vsel %vm42_vm0, %v37_v8, 0  ;;  %v531_v12 = vmul.f32 %v37_v8, %v37_v8  ;;  %s35_s1 = sld [smem:[#allocation2]]  ;;  %s614_s2 = sld [smem:[#allocation2 + $0x1]]  ;;  %v615_v53 = vld [vmem:[%s979_s3] ss:$0 sm:$0xff] }
  0x13   :  { %v713_v13 = vpack.c.bf16 %v50_v5, %v47_v4  ;;  %v127_v14 = vsub.f32 %v38_v0, %v47_v4  ;;  %v134_v15 = vsub.f32 %v39_v1, %v50_v5  ;;  %v141_v16 = vsub.f32 %v40_v2, %v53_v7  ;;  %s858_s3 = smov [#allocation6]  }
  0x14   :  { %v148_v17 = vsub.f32 %v41_v6, %v56_v9  ;;  %v115_v18 = vand.u32 4294901760, %v44_v11  ;;  %v532_v19 = vsel %vm42_vm0, %v531_v12, 0.0  ;;  %v716_v20 = vpack.c.bf16 %v56_v9, %v53_v7  ;;  %s588_s13 = sshll.u32 %s858_s3, 4  ;;  %s589_s13 = int_to_ptr.vmem [resolvable:$true] %s588_s13 }
  0x15   :  { %714 = vmatpush3.bf16.msra.mxu1 %v713_v13  ;;  %732 = vmatpush3.bf16.msra.mxu0 %v713_v13  ;;  %v128_v21 = vand.u32 4294901760, %v127_v14  ;;  %v135_v22 = vand.u32 4294901760, %v134_v15  ;;  %v142_v23 = vand.u32 4294901760, %v141_v16  ;;  %v725_v41 = vpack.c.bf16 %v134_v15, %v127_v14  ;;  %s782_s14 = scalar_lea.vmem %s589_s13, 128  ;;  %p787_p6 = scmp.lt.s32.totalorder %s589_s13, %s589_s13 }
  0x16   :  { %715 = vmatprep.subr.bf16.mxu1 %v855_v3  ;;  %733 = vmatprep.subr.bf16.mxu0 %v855_v3  ;;  %v116_v24 = vsub.f32 %v44_v11, %v115_v18  ;;  %v149_v25 = vand.u32 4294901760, %v148_v17  ;;  %v728_v42 = vpack.c.bf16 %v148_v17, %v141_v16  ;;  %vm557_vm3 = vcmask 64512   ;;  %p783_p5 = scmp.ne.s32.totalorder %s589_s13, %s782_s14  ;;  %p788_p7 = scmp.lt.s32.totalorder %s782_s14, %s782_s14 }
  0x17   :  { %v129_v26 = vsub.f32 %v127_v14, %v128_v21  ;;  %v136_v27 = vsub.f32 %v134_v15, %v135_v22  ;;  %v143_v28 = vsub.f32 %v141_v16, %v142_v23  ;;  %533 = vadd.xlane.f32.xlu0 %v532_v19  ;;  %v737_v33 = vpack.c.bf16 %v135_v22, %v128_v21 }
  0x18   :  { %v117_v29 = vand.u32 4294901760, %v116_v24  ;;  %v150_v30 = vsub.f32 %v148_v17, %v149_v25  ;;  %v740_v39 = vpack.c.bf16 %v149_v25, %v142_v23  ;;  %v535_v45 = vstv %s35_s1  ;;  %p789_p8 = por %p788_p7, %p787_p6 }
  0x19   :  { %717 = vmatpush3.bf16.msra.mxu1 %v716_v20  ;;  %735 = vmatpush3.bf16.msra.mxu0 %v716_v20  ;;  %v130_v31 = vand.u32 4294901760, %v129_v26  ;;  %v137_v32 = vand.u32 4294901760, %v136_v27  ;;  %v144_v36 = vand.u32 4294901760, %v143_v28  ;;  %v537_v48 = vstv %s614_s2 }
  0x1a   :  { %v118_v34 = vsub.f32 %v116_v24, %v117_v29  ;;  %718 = vmatprep.subr.bf16.mxu1 %v855_v3  ;;  %736 = vmatprep.subr.bf16.mxu0 %v855_v3  ;;  %v151_v37 = vand.u32 4294901760, %v150_v30  ;;  %p790_p9 = pnand %p789_p8, %p783_p5 }
  0x1b   :  { %v719_v35 = vpack.c.bf16 %v137_v32, %v130_v31 }
  0x1c   :  { %v119_v38 = vand.u32 4294901760, %v118_v34  ;;  %688 = vmatmul.mubr.f32.vlgmr.msra.gmra.mrb[0].mxu0 %v117_v29  ;;  %v722_v40 = vpack.c.bf16 %v151_v37, %v144_v36 }
  0x1d   :  { %738 = vmatpush3.bf16.msra.mxu0 %v737_v33  ;;  %698 = vmatprep.mubr.msk.f32.mxu0 %vm856_vm1, %v857_v10 }
  0x1e   :  { %655 = vmatmul.mubr.f32.vlgmr.msra.gmra.mrb[0].mxu1 %v119_v38  ;;  %739 = vmatprep.subr.bf16.mxu0 %v855_v3 }
  0x1f   :  { %720 = vmatpush3.bf16.msra.mxu1 %v719_v35  ;;  %665 = vmatprep.mubr.msk.f32.mxu1 %vm856_vm1, %v857_v10 }
  0x20   :  { %721 = vmatprep.subr.bf16.mxu1 %v855_v3 }
  0x21   :  { %741 = vmatpush3.bf16.msra.mxu0 %v740_v39 }
  0x22   :  { %742 = vmatprep.subr.bf16.mxu0 %v855_v3 }
  0x23   :  { %723 = vmatpush3.bf16.msra.mxu1 %v722_v40 }
  0x24   :  { %724 = vmatprep.subr.bf16.mxu1 %v855_v3  ;;  %699 = vmatmul.mubr.f32.vlgmr.msra.gmra.mrb[0].mxu0 %v115_v18 }
  0x25   :  { %744 = vmatpush3.bf16.msra.mxu0 %v713_v13  ;;  %709 = vmatprep.mubr.msk.f32.mxu0 %vm856_vm1, %v857_v10 }
  0x26   :  { %666 = vmatmul.mubr.f32.vlgmr.msra.gmra.mrb[0].mxu1 %v115_v18  ;;  %745 = vmatprep.subr.bf16.mxu0 %v855_v3 }
  0x27   :  { %726 = vmatpush3.bf16.msra.mxu1 %v725_v41  ;;  %676 = vmatprep.mubr.msk.f32.mxu1 %vm856_vm1, %v857_v10 }
  0x28   :  { %727 = vmatprep.subr.bf16.mxu1 %v855_v3 }
  0x29   :  { %747 = vmatpush3.bf16.msra.mxu0 %v716_v20 }
  0x2b   :  { %729 = vmatpush3.bf16.msra.mxu1 %v728_v42 }
  0x2c   :  { %710 = vmatmul.mubr.f32.vlgmr.msra.gmra.mrb[0].mxu0 %v115_v18 }
  0x2e   :  { %677 = vmatmul.mubr.f32.vlgmr.msra.gmra.mrb[0].mxu1 %v116_v24 }
  0xa4   :  { %v534_v44 = vpop.xlane.xlu0 %533 }
  0xa5   :  { %v536_v51 = vmul.f32 %v535_v45, %v534_v44 }
  0xff   :  { %v527_v43 = vpop.f32.mrb[0].mxu0 }
 0x100   :  { %v711_v46 = vpop.f32.mrb[1].mxu0 }
 0x101   :  { %v292_v47 = vpop.f32.mrb[0].mxu1 }
 0x102   :  { %v748_v49 = vadd.f32 %v527_v43, %v292_v47  ;;  %v678_v50 = vpop.f32.mrb[1].mxu1 }
 0x104   :  { %v538_v52 = vmul.f32 %v748_v49, %v537_v48 }
 0x106   :  { %v539_v54 = vsub.f32 %v536_v51, %v538_v52 }
 0x108   :  { %v547_v55 = vadd.f32 %v615_v53, %v539_v54 }
 0x10a   :  { %v548_v56 = vmax.f32 %v547_v55, 0.0 }
 0x10c   :  { %764 = vrsqrt.f32 %v548_v56  ;;  %vm551_vm2 = vcmp.eq.f32.partialorder %v548_v56, inf  ;;  %v554_v59 = vand.u32 2147483648, %v548_v56  ;;  %vm553_vm4 = vcmp.eq.f32.partialorder %v548_v56, 0.0 }
 0x116   :  { %v765_v57 = vpop.eup %764 }
 0x117   :  { %v550_v58 = vmul.f32 %v765_v57, %v548_v56 }
 0x119   :  { %v552_v60 = vsel %vm551_vm2, %v548_v56, %v550_v58 }
 0x11a   :  { %v555_v61 = vsel %vm553_vm4, %v554_v59, %v552_v60 }
 0x11b   :  { %v556_v62 = vsub.f32 0.0, %v555_v61  ;;  %571 = vst.msk [vmem:[#allocation8] sm:$0xff] %vm557_vm3, %v555_v61 }
 0x11d   :  { %v558_v63 = vsel %vm557_vm3, %v556_v62, -inf  ;;  %570 = vst.msk [vmem:[#allocation6] sm:$0xff] %vm557_vm3, %v556_v62 }
 0x11e   :  { %559 = vmax.xlane.f32.xlu0 %v558_v63 }
 0x1ab   :  { %v560_v0 = vpop.xlane.xlu0 %559 }
 0x1ac   :  { %v561_v1 = vsub.f32 %v556_v62, %v560_v0 }
 0x1ae   :  { %v562_v2 = vmul.f32 1.442695, %v561_v1 }
 0x1b0   :  { %766 = vpow2.f32 %v562_v2 }
 0x1ba   :  { %v767_v3 = vpop.eup %766 }
 0x1bb   :  { %v564_v4 = vsel %vm557_vm3, %v767_v3, 0.0 }
 0x1bc   :  { %565 = vadd.xlane.f32.xlu1 %v564_v4 }
 0x1bd   :  { %793 = shalt.err (!%p790_p9)
}
 0x1be   :  { %s794_s17 = scalar_lea.hbm %s981_s5, 128 }
 0x1bf   :  { %p795_p10 = scmp.ne.s32.totalorder %s981_s5, %s794_s17  ;;  %p798_p11 = scmp.lt.u32.totalorder %s794_s17, %s981_s5 }
 0x1c1   :  { %p800_p12 = pnand %p798_p11, %p795_p10 }
 0x1c3   :  { %803 = shalt.err (!%p800_p12)
}
 0x1c4   :  { %591 = dma.vmem_to_hbm [thread:$0]  %s589_s13, 128, %s981_s5, [#allocation7]  }
 0x1c5   :  { %s859_s24 = smov [#allocation8]  }
 0x1c6   :  { %s598_s25 = sshll.u32 %s859_s24, 4  ;;  %s599_s25 = int_to_ptr.vmem [resolvable:$true] %s598_s25 }
 0x1c7   :  { %s804_s26 = scalar_lea.vmem %s599_s25, 128  ;;  %p809_p0 = scmp.lt.s32.totalorder %s599_s25, %s599_s25 }
 0x1c8   :  { %p805_p13 = scmp.ne.s32.totalorder %s599_s25, %s804_s26  ;;  %p810_p1 = scmp.lt.s32.totalorder %s804_s26, %s804_s26 }
 0x1ca   :  { %p811_p2 = por %p810_p1, %p809_p0 }
 0x1cc   :  { %p812_p3 = pnand %p811_p2, %p805_p13 }
 0x1ce   :  { %815 = shalt.err (!%p812_p3)
}
 0x1cf   :  { %s816_s29 = scalar_lea.hbm %s982_s6, 128 }
 0x1d0   :  { %p817_p4 = scmp.ne.s32.totalorder %s982_s6, %s816_s29  ;;  %p820_p5 = scmp.lt.u32.totalorder %s816_s29, %s982_s6 }
 0x1d2   :  { %p822_p6 = pnand %p820_p5, %p817_p4 }
 0x1d4   :  { %825 = shalt.err (!%p822_p6)
}
 0x1d5   :  { %601 = dma.vmem_to_hbm [thread:$0]  %s599_s25, 128, %s982_s6, [#allocation7]  }
 0x1d6   :  { %s860_s10 = smov [#allocation5]  }
 0x1d7   :  { %s578_s1 = sshll.u32 %s860_s10, 4  ;;  %s579_s1 = int_to_ptr.vmem [resolvable:$true] %s578_s1 }
 0x1d8   :  { %s826_s2 = scalar_lea.vmem %s579_s1, 128  ;;  %p831_p8 = scmp.lt.s32.totalorder %s579_s1, %s579_s1 }
 0x1d9   :  { %p827_p7 = scmp.ne.s32.totalorder %s579_s1, %s826_s2  ;;  %p832_p9 = scmp.lt.s32.totalorder %s826_s2, %s826_s2 }
 0x1db   :  { %p833_p10 = por %p832_p9, %p831_p8 }
 0x1dd   :  { %p834_p11 = pnand %p833_p10, %p827_p7 }
 0x249   :  { %v566_v5 = vpop.xlane.xlu1 %565 }
 0x24a   :  { %768 = vrcp.f32 %v566_v5 }
 0x254   :  { %v769_v6 = vpop.eup %768 }
 0x255   :  { %v568_v7 = vmul.f32 %v769_v6, %v767_v3 }
 0x257   :  { %569 = vst.msk [vmem:[#allocation5] sm:$0xff] %vm557_vm3, %v568_v7 }
 0x258   :  { %837 = shalt.err (!%p834_p11)
}
 0x259   :  { %s838_s6 = scalar_lea.hbm %s980_s4, 128 }
 0x25a   :  { %p839_p12 = scmp.ne.s32.totalorder %s980_s4, %s838_s6  ;;  %p842_p13 = scmp.lt.u32.totalorder %s838_s6, %s980_s4 }
 0x25c   :  { %p844_p0 = pnand %p842_p13, %p839_p12 }
 0x25e   :  { %847 = shalt.err (!%p844_p0)
}
 0x25f   :  { %581 = dma.vmem_to_hbm [thread:$0]  %s579_s1, 128, %s980_s4, [#allocation3]  }
 0x260   :  { %850 = dma.done.wait [#allocation3], 128  }
 0x261   :  { %851 = vsyncadd [#allocation3], 4294967168 }
 0x262   :  { %852 = dma.done.wait [#allocation7], 256  }
 0x263   :  { %853 = vsyncadd [#allocation7], 4294967040 }
 0x264   :  { %611 = vsyncpa [#allocation3], 1 }
 0x265   :  { %612 = vsyncpa [#allocation7], 1 }
 0x266   :  { %613 = vsyncpa [#allocation4], 1 }

</bundles_post_ra>
